<compile_context>
chip_gen: v5e
topology: v5e:2x2
jax: 0.10.0
libtpu: 0.0.40
codegen_flags: <defaults>
</compile_context>

<pallas_src>
import functools

import jax
import jax.numpy as jnp
from jax.experimental import pallas as pl
from jax.experimental.pallas import tpu as pltpu

THRESHOLD = 0.0549   # G1415 default
FACTOR = 1.5
BN_EPS = 1e-5

# Per-step VMEM budget for the pipelined tiles (double-buffered input + output).
# ~10 MiB fits under every generation's default scoped VMEM (v5e 16 MiB,
# v6e/v7x 32 MiB) and leaves room for weights / compiler scratch.
_VMEM_TILE_BUDGET = 10 * 1024 * 1024
_MAX_SPATIAL_TILE = 65536                 # lanes per step
_VMEM_LIMIT_BYTES = 32 * 1024 * 1024      # safe on v5e/v6e (128 MiB) and v7x (64 MiB)


def g1415_kernel(x_ref, w_ref, shift_ref, o_ref, *, threshold, factor):
    # x_ref:     (BN, 3,  TS)  channel rows = (r, g, b), spatial on lanes
    # w_ref:     (C2, 3)       conv weight with BN scale pre-folded
    # shift_ref: (C2, 1)       folded BN shift
    # o_ref:     (BN, C2, TS)
    x = x_ref[...]                                   # (BN, 3, TS)
    r = x[:, 0:1, :]                                 # (BN, 1, TS)
    g = x[:, 1:2, :]                                 # (BN, 1, TS)
    # (g-r > thr).half()*factor ; zeros -> 1   ==   where(g-r > thr, factor, 1)
    # (matches the PyTorch semantics for factor != 0, the module default).
    mask = jnp.where(g - r > threshold, jnp.float32(factor), jnp.float32(1.0))
    y = x * mask                                     # (BN, 3, TS)

    w = w_ref[...]                                   # (C2, 3)
    # K=3 "1x1 conv" over channels as VPU broadcast-FMAs (tiny-K MXU avoided).
    acc = (w[None, :, 0:1] * y[:, 0:1, :]
           + w[None, :, 1:2] * y[:, 1:2, :]
           + w[None, :, 2:3] * y[:, 2:3, :])         # (BN, C2, TS)
    acc = acc + shift_ref[...][None]                 # (1, C2, 1) broadcast over lanes
    # SiLU; dtype cast (e.g. to bf16) happens at the store.
    o_ref[...] = (acc * jax.nn.sigmoid(acc)).astype(o_ref.dtype)


def _select_blocks(N, S, C1, C2):
    """Pick (BN, TS, n_spatial_blocks).

    TS is a multiple of 128 (or the full spatial extent) sized from the VMEM
    budget; ragged spatial tails are handled by a cdiv grid + Pallas masking,
    so no exact-divisor search is needed.  When the whole spatial extent fits
    in one block, several batch images are packed per grid step to amortize
    the ~0.35 us per-step overhead, while keeping >= 2 total grid blocks so
    both v7x TensorCores get work.
    """
    per_lane = 2 * (C1 + C2) * 4                       # double-buffered f32 in + out
    cap = (_VMEM_TILE_BUDGET // per_lane) // 128 * 128
    cap = max(128, min(_MAX_SPATIAL_TILE, cap))

    if S <= cap:
        ts = S                                         # full-extent lane block (always legal)
    else:
        ts = cap                                       # multiple of 128; tail masked by Pallas
    n_s = pl.cdiv(S, ts)

    bn = 1
    if n_s == 1 and N >= 2:
        # Pack batch images per step, but keep >= 2 grid blocks (v7x megacore).
        max_bn = min(N // 2, max(1, _VMEM_TILE_BUDGET // (per_lane * S)))
        for cand in range(max_bn, 0, -1):
            if N % cand == 0:
                bn = cand
                break
    elif N * n_s < 2 and S >= 256:
        # A single-block grid would idle one v7x TensorCore: split spatially.
        ts = max(128, (S // 2) // 128 * 128)
        n_s = pl.cdiv(S, ts)

    return bn, ts, n_s


def g1415_forward(x_nchw, conv_w, gamma, beta, run_mean, run_var,
                  *, threshold=THRESHOLD, factor=FACTOR, out_dtype=None):
    N, C1, H, W = x_nchw.shape
    assert C1 == 3, "G1415 requires 3 input channels (r, g, b)"
    C2 = conv_w.shape[0]
    S = H * W
    # On v6e/v7x pass out_dtype=jnp.bfloat16 to halve output write traffic
    # (the dominant byte stream); default keeps float32 for module parity.
    out_dtype = x_nchw.dtype if out_dtype is None else out_dtype

    BN, TS, n_s = _select_blocks(N, S, C1, C2)
    grid = (N // BN, n_s)

    # Free reshapes only — data stays in NCHW order in HBM (no transposes).
    x_rows = x_nchw.reshape(N, C1, S)                              # (N, 3, S)

    # Fold BatchNorm (inference) into the conv weight / shift once, in plain JAX.
    scale = gamma / jnp.sqrt(run_var + BN_EPS)                     # (C2,)
    w_folded = conv_w.reshape(C2, C1) * scale[:, None]             # (C2, 3)
    shift = (beta - run_mean * scale).reshape(C2, 1)               # (C2, 1)

    out = pl.pallas_call(
        functools.partial(g1415_kernel, threshold=threshold, factor=factor),
        out_shape=jax.ShapeDtypeStruct((N, C2, S), out_dtype),
        grid_spec=pltpu.PrefetchScalarGridSpec(
            num_scalar_prefetch=0,
            grid=grid,
            in_specs=[
                # batch block, channels on sublanes, spatial tile on lanes
                pl.BlockSpec((BN, C1, TS), lambda n, s: (n, 0, s)),
                pl.BlockSpec((C2, C1), lambda n, s: (0, 0)),       # folded conv weight
                pl.BlockSpec((C2, 1), lambda n, s: (0, 0)),        # folded BN shift
            ],
            out_specs=pl.BlockSpec((BN, C2, TS), lambda n, s: (n, 0, s)),
        ),
        compiler_params=pltpu.CompilerParams(
            dimension_semantics=("parallel", "parallel"),
            vmem_limit_bytes=_VMEM_LIMIT_BYTES),
    )(x_rows, w_folded, shift)

    return out.reshape(N, C2, H, W)                                # still NCHW


def reference(x, conv_w, gamma, beta, run_mean, run_var):
    r = x[:, 0, :, :]
    g = x[:, 1, :, :]
    mask = jnp.where(g - r > THRESHOLD, FACTOR, 1.0).astype(jnp.float32)
    y = x * mask[:, None, :, :]                                    # (N,3,H,W)
    conv = jnp.einsum("nchw,oc->nohw", y, conv_w.reshape(conv_w.shape[0], 3))
    scale = gamma / jnp.sqrt(run_var + BN_EPS)
    shift = beta - run_mean * scale
    out = conv * scale[None, :, None, None] + shift[None, :, None, None]
    return out * jax.nn.sigmoid(out)


if __name__ == "__main__":
    key = jax.random.PRNGKey(0)
    k_x, k_w, k_g, k_b, k_m, k_v = jax.random.split(key, 6)

    N, C1, H, W = 2, 3, 16, 16
    C2 = 16

    x = jax.random.normal(k_x, (N, C1, H, W), dtype=jnp.float32) * 0.5
    conv_w = jax.random.normal(k_w, (C2, C1, 1, 1), dtype=jnp.float32) * 0.1
    gamma = 1.0 + 0.1 * jax.random.normal(k_g, (C2,), dtype=jnp.float32)
    beta = 0.05 * jax.random.normal(k_b, (C2,), dtype=jnp.float32)
    run_mean = 0.1 * jax.random.normal(k_m, (C2,), dtype=jnp.float32)
    run_var = 1.0 + 0.1 * jax.random.uniform(k_v, (C2,), dtype=jnp.float32)

    out = g1415_forward(x, conv_w, gamma, beta, run_mean, run_var)
    out = jax.block_until_ready(out)

    ref = reference(x, conv_w, gamma, beta, run_mean, run_var)
    assert out.shape == (N, C2, H, W)
    assert jnp.allclose(out, ref, atol=1e-5, rtol=1e-5), "mismatch vs reference"

    print("KERNEL_OK")
</pallas_src>

<mosaic_0001>
module attributes {stable_mosaic.version = 11 : i64} {
  func.func @g1415_kernel(%arg0: i32, %arg1: i32, %arg2: memref<1x3x256xf32, #tpu.memory_space<vmem>>, %arg3: memref<16x3xf32, #tpu.memory_space<vmem>>, %arg4: memref<16x1xf32, #tpu.memory_space<vmem>>, %arg5: memref<1x16x256xf32, #tpu.memory_space<vmem>>) attributes {dimension_semantics = [#tpu.dimension_semantics<parallel>, #tpu.dimension_semantics<parallel>], iteration_bounds = array<i64: 2, 1>, scalar_prefetch = 0 : i64, scratch_operands = 0 : i64, tpu.core_type = #tpu.core_type<tc>, window_params = [{transform_indices = @transform_0, window_bounds = array<i64: 1, 3, 256>}, {pipeline_mode = #tpu.pipeline_mode<synchronous>, transform_indices = @transform_1, window_bounds = array<i64: 16, 3>}, {pipeline_mode = #tpu.pipeline_mode<synchronous>, transform_indices = @transform_2, window_bounds = array<i64: 16, 1>}, {transform_indices = @transform_3, window_bounds = array<i64: 1, 16, 256>}]} {
    %c0 = arith.constant 0 : index
    %c0_0 = arith.constant 0 : index
    %c0_1 = arith.constant 0 : index
    %0 = vector.load %arg2[%c0, %c0_0, %c0_1] : memref<1x3x256xf32, #tpu.memory_space<vmem>>, vector<1x3x256xf32>
    %1 = vector.extract_strided_slice %0 {offsets = [0, 0, 0], sizes = [1, 1, 256], strides = [1, 1, 1]} : vector<1x3x256xf32> to vector<1x1x256xf32>
    %2 = vector.extract_strided_slice %0 {offsets = [0, 1, 0], sizes = [1, 1, 256], strides = [1, 1, 1]} : vector<1x3x256xf32> to vector<1x1x256xf32>
    %3 = arith.subf %2, %1 : vector<1x1x256xf32>
    %cst = arith.constant 5.490000e-02 : f32
    %4 = vector.broadcast %cst : f32 to vector<1x1x256xf32>
    %5 = arith.cmpf ogt, %3, %4 : vector<1x1x256xf32>
    %cst_2 = arith.constant 1.500000e+00 : f32
    %cst_3 = arith.constant 1.000000e+00 : f32
    %6 = vector.broadcast %cst_2 : f32 to vector<1x1x256xf32>
    %7 = vector.broadcast %cst_3 : f32 to vector<1x1x256xf32>
    %8 = arith.select %5, %6, %7 : vector<1x1x256xi1>, vector<1x1x256xf32>
    %9 = vector.broadcast %8 : vector<1x1x256xf32> to vector<1x3x256xf32>
    %10 = arith.mulf %0, %9 : vector<1x3x256xf32>
    %c0_4 = arith.constant 0 : index
    %c0_5 = arith.constant 0 : index
    %11 = vector.load %arg3[%c0_4, %c0_5] : memref<16x3xf32, #tpu.memory_space<vmem>>, vector<16x3xf32>
    %12 = vector.extract_strided_slice %11 {offsets = [0, 0], sizes = [16, 1], strides = [1, 1]} : vector<16x3xf32> to vector<16x1xf32>
    %13 = vector.shape_cast %12 : vector<16x1xf32> to vector<1x16x1xf32>
    %14 = vector.extract_strided_slice %10 {offsets = [0, 0, 0], sizes = [1, 1, 256], strides = [1, 1, 1]} : vector<1x3x256xf32> to vector<1x1x256xf32>
    %15 = vector.broadcast %13 : vector<1x16x1xf32> to vector<1x16x256xf32>
    %16 = vector.broadcast %14 : vector<1x1x256xf32> to vector<1x16x256xf32>
    %17 = arith.mulf %15, %16 : vector<1x16x256xf32>
    %18 = vector.extract_strided_slice %11 {offsets = [0, 1], sizes = [16, 1], strides = [1, 1]} : vector<16x3xf32> to vector<16x1xf32>
    %19 = vector.shape_cast %18 : vector<16x1xf32> to vector<1x16x1xf32>
    %20 = vector.extract_strided_slice %10 {offsets = [0, 1, 0], sizes = [1, 1, 256], strides = [1, 1, 1]} : vector<1x3x256xf32> to vector<1x1x256xf32>
    %21 = vector.broadcast %19 : vector<1x16x1xf32> to vector<1x16x256xf32>
    %22 = vector.broadcast %20 : vector<1x1x256xf32> to vector<1x16x256xf32>
    %23 = arith.mulf %21, %22 : vector<1x16x256xf32>
    %24 = arith.addf %17, %23 : vector<1x16x256xf32>
    %25 = vector.extract_strided_slice %11 {offsets = [0, 2], sizes = [16, 1], strides = [1, 1]} : vector<16x3xf32> to vector<16x1xf32>
    %26 = vector.shape_cast %25 : vector<16x1xf32> to vector<1x16x1xf32>
    %27 = vector.extract_strided_slice %10 {offsets = [0, 2, 0], sizes = [1, 1, 256], strides = [1, 1, 1]} : vector<1x3x256xf32> to vector<1x1x256xf32>
    %28 = vector.broadcast %26 : vector<1x16x1xf32> to vector<1x16x256xf32>
    %29 = vector.broadcast %27 : vector<1x1x256xf32> to vector<1x16x256xf32>
    %30 = arith.mulf %28, %29 : vector<1x16x256xf32>
    %31 = arith.addf %24, %30 : vector<1x16x256xf32>
    %c0_6 = arith.constant 0 : index
    %c0_7 = arith.constant 0 : index
    %32 = vector.load %arg4[%c0_6, %c0_7] : memref<16x1xf32, #tpu.memory_space<vmem>>, vector<16x1xf32>
    %33 = vector.shape_cast %32 : vector<16x1xf32> to vector<1x16x1xf32>
    %34 = vector.broadcast %33 : vector<1x16x1xf32> to vector<1x16x256xf32>
    %35 = arith.addf %31, %34 : vector<1x16x256xf32>
    %36 = arith.negf %35 : vector<1x16x256xf32>
    %37 = math.exp %36 : vector<1x16x256xf32>
    %cst_8 = arith.constant 1.000000e+00 : f32
    %38 = vector.broadcast %cst_8 : f32 to vector<1x16x256xf32>
    %39 = arith.addf %38, %37 : vector<1x16x256xf32>
    %40 = arith.divf %38, %39 : vector<1x16x256xf32>
    %41 = arith.mulf %35, %40 : vector<1x16x256xf32>
    %c0_9 = arith.constant 0 : index
    %c0_10 = arith.constant 0 : index
    %c0_11 = arith.constant 0 : index
    %42 = vector.load %arg5[%c0_9, %c0_10, %c0_11] : memref<1x16x256xf32, #tpu.memory_space<vmem>>, vector<1x16x256xf32>
    tpu.vector_store %arg5[%c0_9, %c0_10, %c0_11], %41 {strides = array<i32>} : memref<1x16x256xf32, #tpu.memory_space<vmem>>, vector<1x16x256xf32>,
    return
  }
  func.func @transform_0(%arg0: i32, %arg1: i32) -> (i32, i32, i32) {
    %c0_i32 = arith.constant 0 : i32
    %c0_i32_0 = arith.constant 0 : i32
    return %arg0, %c0_i32, %arg1 : i32, i32, i32
  }
  func.func @transform_1(%arg0: i32, %arg1: i32) -> (i32, i32) {
    %c0_i32 = arith.constant 0 : i32
    %c0_i32_0 = arith.constant 0 : i32
    %c0_i32_1 = arith.constant 0 : i32
    return %c0_i32, %c0_i32_0 : i32, i32
  }
  func.func @transform_2(%arg0: i32, %arg1: i32) -> (i32, i32) {
    %c0_i32 = arith.constant 0 : i32
    %c0_i32_0 = arith.constant 0 : i32
    %c0_i32_1 = arith.constant 0 : i32
    return %c0_i32, %c0_i32_0 : i32, i32
  }
  func.func @transform_3(%arg0: i32, %arg1: i32) -> (i32, i32, i32) {
    %c0_i32 = arith.constant 0 : i32
    %c0_i32_0 = arith.constant 0 : i32
    return %arg0, %c0_i32, %arg1 : i32, i32, i32
  }
}

</mosaic_0001>

<bundles_post_ra>
// kernel: tpu_custom_call.1
= control target key start
LH: loop header
LB: loop body
LE: loop exit
PB: predicated region body
PF: predicated region fallthrough
CT: control target
= control target key end

     0   :  { %8 = vsyncpa [#allocation3], 0  ;;  %s852_s0 = inlined_call_operand.vmem [shape: f32[2,3,256], index: 0, kind: input, shape index: {}]   ;;  %s853_s1 = inlined_call_operand.vmem [shape: f32[16,3], index: 1, kind: input, shape index: {}]   ;;  %s854_s2 = inlined_call_operand.vmem [shape: f32[16,1], index: 2, kind: input, shape index: {}]   ;;  %s855_s3 = inlined_call_operand.hbm [shape: f32[2,16,256], index: 3, kind: output, shape index: {}]  }
   0x1   :  { %10 = vsyncpa [#allocation3 + $0x1], 0  ;;  %s691_s12 = smov 0   ;;  %s693_s13 = smov 0  }
   0x2   :  { %s695_s14 = smov 0   ;;  %s697_s15 = smov 0  }
   0x3   :  { %s699_s16 = smov 0   ;;  %s701_s17 = smov 0  }
   0x4 LB: > { %s485_s18 = sadd.s32 4294967295, %s663_s17   ;;  %s486_s19 = sadd.s32 4294967294, %s663_s17   ;;  %s663_s17 = sphi %s701_s17, %s16_s17   ;;  %s659_s16 = sphi %s699_s16, %s866_s16   ;;  %s655_s15 = sphi %s697_s15, %s865_s15   ;;  %s651_s14 = sphi %s695_s14, %s864_s14   ;;  %s647_s13 = sphi %s693_s13, %s863_s13   ;;  %s643_s12 = sphi %s691_s12, %s862_s12  }
   0x5   : > { %s28_s20 = sadd.s32 1, %s659_s16  ;;  %s107_s21 = sadd.s32 1, %s651_s14 }
   0x6   : > { %p30_p0 = scmp.ge.s32.totalorder %s28_s20, 2  ;;  %p117_p1 = scmp.ne.s32.totalorder %s651_s14, %s647_s13 }
   0x7   : > { %p118_p2 = scmp.eq.s32.totalorder %s485_s18, 1  ;;  %p123_p3 = scmp.ne.s32.totalorder %s647_s13, %s643_s12 }
   0x8   : > { %s868_s20 = smov (%p30_p0, %s28_s20), 0  ;;  %p124_p5 = scmp.eq.s32.totalorder %s486_s19, 1 }
   0x9   : > { %p731_p4 = por %p118_p2, %p117_p1  ;;  %s102_s23 = ssub.s32 %s659_s16, %s868_s20 }
   0xa   : > { %p489_p6 = scmp.ge.s32.totalorder %s663_s17, 1  ;;  %p105_p7 = scmp.eq.s32.totalorder %s102_s23, 0 }
   0xb   : > { %p738_p8 = por %p124_p5, %p123_p3  ;;  %p161_p9 = scmp.lt.s32.totalorder %s663_s17, 3 }
   0xc   : > { %s744_s25 = scalar_select %p105_p7, %s651_s14, %s107_s21  }
   0xd   : > { %p162_p10 = pnand %p489_p6, %p161_p9 }
   0xe   : > { %p190_p11 = scmp.lt.s32.totalorder (!%p162_p10), %s655_s15, 1  ;;  %s186_s18 = sand.u32 (!%p162_p10), 1, %s647_s13  }
   0xf   : > { %165 = sbr.rel (%p162_p10) target bundleno = 192 (0xc0), region = 32  ;;  %s490_s19 = sshll.u32 (!%p162_p10), %s186_s18, 5 }
  0x10   : > { %s503_s21 = sshll.u32 (!%p162_p10), %s655_s15, 5  ;;  %s188_s27 = scalar_lea.vmem (!%p162_p10), [#allocation2], %s490_s19 }
  0x11   : > { %s804_s26 = scalar_lea.hbm (!%p162_p10), %s855_s3, %s503_s21  ;;  %s403_s28 = sshll.u32 (!%p162_p10), %s188_s27, 4  ;;  %s404_s28 = int_to_ptr.vmem [resolvable:$true] %s403_s28 }
  0x12   : > { %s405_s29 = sshll.u32 (!%p162_p10), %s804_s26, 4  ;;  %s389_s30 = scalar_lea.sflag (!%p162_p10), [#allocation3], %s186_s18  ;;  %s406_s29 = int_to_ptr.hbm [resolvable:$true] %s405_s29 }
  0x13   : > { %s599_s4 = sshra.s32 (!%p162_p10), %s406_s29, 4  ;;  %s600_s4 = int_to_ptr.hbm [resolvable:$true] %s599_s4 }
  0x14   : > { %v221_v0 = vld [vmem:[%s853_s1] sm:$0xff]  ;;  %v665_v1 = vmov 1   ;;  %v666_v2 = vmov 0   ;;  %v667_v3 = vmov 2   ;;  %v222_v4 = vld [vmem:[%s853_s1 + $0x8] sm:$0xff]  ;;  %s191_s7 = scalar_select %p190_p11, %s655_s15, 1 }
  0x15   : > { %566 = vset.pattern.permute.xlu1 %v665_v1  ;;  %565 = vset.pattern.permute.xlu0 %v666_v2  ;;  %v288_v5 = vld [vmem:[%s854_s2] sm:$0xff]  ;;  %v289_v6 = vld [vmem:[%s854_s2 + $0x8] sm:$0xff]  ;;  %v668_v10 = vmov 1.0   ;;  %vm217_vm1 = vcmask 1043456   ;;  %s601_s5 = scalar_lea.hbm %s600_s4, 32  ;;  %p606_p1 = scmp.lt.s32.totalorder %s600_s4, %s855_s3 }
  0x16   : > { %245 = vperm.xlu1 %566, %v221_v0   ;;  %225 = vperm.xlu0 %565, %v221_v0   ;;  %s502_s8 = sshll.u32 %s191_s7, 3  ;;  %p602_p12 = scmp.ne.s32.totalorder %s600_s4, %s601_s5 }
  0x17   : > { %567 = vset.pattern.permute.xlu2 %v667_v3  ;;  %s197_s11 = scalar_lea.vmem %s852_s0, %s502_s8  ;;  %s605_s8 = scalar_lea.hbm %s855_s3, 64 }
  0x18   : > { %267 = vperm.xlu2 %567, %v221_v0   ;;  %v200_v7 = vld [vmem:[%s197_s11] sm:$0x77]  ;;  %p603_p13 = pnand %p602_p12, %p731_p4  ;;  %p607_p2 = scmp.lt.s32.totalorder %s605_s8, %s601_s5 }
  0x19   : > { %v202_v8 = vrot.slane %v200_v7, 7 }
  0x1a   : > { %p604_p0 = pneg %p603_p13  ;;  %p608_p3 = por %p607_p2, %p606_p1 }
  0x1b   : > { %v204_v9 = vsub.f32 %v200_v7, %v202_v8 }
  0x1c   : > { %p609_p5 = pnand %p608_p3, %p604_p0 }
  0x1d   : > { %vm205_vm0 = vcmp.gt.f32.partialorder %v204_v9, 0.0549 }
  0x1e   : > { %249 = vperm.xlu1 %566, %v222_v4   ;;  %230 = vperm.xlu0 %565, %v222_v4   ;;  %v206_v11 = vsel %vm205_vm0, 1.5, %v668_v10 }
  0x1f   : > { %v209_v12 = vperm.slane %v206_v11, 5  ;;  %v208_v13 = vperm.slane %v206_v11, 1 }
  0x20   : > { %271 = vperm.xlu2 %567, %v222_v4  }
  0x21   : > { %v213_v14 = vperm.slane %v209_v12, 1  ;;  %v212_v15 = vperm.slane %v208_v13, 1 }
  0x23   : > { %v216_v16 = vrot.slane %v213_v14, 4 }
  0x25   : > { %v218_v17 = vsel %vm217_vm1, %v212_v15, %v216_v16 }
  0x26   : > { %568 = vset.pattern.permute.xlu1 %v666_v2  ;;  %292 = vperm.xlu0 %565, %v288_v5   ;;  %v220_v18 = vmul.f32 %v218_v17, %v200_v7 }
  0x27   : > { %297 = vperm.xlu1 %568, %v289_v6  }
  0x28   : > { %v252_v19 = vperm.slane %v220_v18, 1  ;;  %v253_v20 = vperm.slane %v220_v18, 5  ;;  %v234_v21 = vperm.slane %v220_v18, 0  ;;  %v235_v22 = vperm.slane %v220_v18, 4 }
  0x29   : > { %v274_v26 = vperm.slane %v220_v18, 2  ;;  %v275_v27 = vperm.slane %v220_v18, 6 }
  0x2a   : > { %v256_v28 = vperm.slane %v252_v19, 1  ;;  %v257_v29 = vperm.slane %v253_v20, 1  ;;  %v238_v30 = vperm.slane %v234_v21, 0  ;;  %v239_v31 = vperm.slane %v235_v22, 0 }
  0x2b   : > { %v278_v32 = vperm.slane %v274_v26, 2  ;;  %v279_v33 = vperm.slane %v275_v27, 2 }
  0x72   : > { %v268_v25 = vpop.permute.xlu2 %267 }
  0x73   : > { %v280_v44 = vmul.f32 %v278_v32, %v268_v25  ;;  %v281_v45 = vmul.f32 %v279_v33, %v268_v25 }
  0x7a   : > { %v272_v48 = vpop.permute.xlu2 %271 }
  0x7b   : > { %v282_v51 = vmul.f32 %v278_v32, %v272_v48  ;;  %v283_v52 = vmul.f32 %v279_v33, %v272_v48 }
  0x88   : > { %v246_v23 = vpop.permute.xlu1 %245  ;;  %v226_v24 = vpop.permute.xlu0 %225 }
  0x89   : > { %v258_v34 = vmul.f32 %v256_v28, %v246_v23  ;;  %v259_v35 = vmul.f32 %v257_v29, %v246_v23  ;;  %v240_v36 = vmul.f32 %v238_v30, %v226_v24  ;;  %v241_v37 = vmul.f32 %v239_v31, %v226_v24 }
  0x8b   : > { %v262_v46 = vadd.f32 %v258_v34, %v240_v36  ;;  %v263_v47 = vadd.f32 %v259_v35, %v241_v37 }
  0x8d   : > { %v284_v53 = vadd.f32 %v280_v44, %v262_v46  ;;  %v285_v54 = vadd.f32 %v281_v45, %v263_v47 }
  0x90   : > { %v250_v38 = vpop.permute.xlu1 %249  ;;  %v231_v39 = vpop.permute.xlu0 %230 }
  0x91   : > { %v260_v40 = vmul.f32 %v256_v28, %v250_v38  ;;  %v261_v41 = vmul.f32 %v257_v29, %v250_v38  ;;  %v242_v42 = vmul.f32 %v238_v30, %v231_v39  ;;  %v243_v43 = vmul.f32 %v239_v31, %v231_v39 }
  0x93   : > { %v264_v49 = vadd.f32 %v260_v40, %v242_v42  ;;  %v265_v50 = vadd.f32 %v261_v41, %v243_v43 }
  0x95   : > { %v286_v56 = vadd.f32 %v282_v51, %v264_v49  ;;  %v287_v57 = vadd.f32 %v283_v52, %v265_v50 }
  0x98   : > { %v293_v55 = vpop.permute.xlu0 %292 }
  0x99   : > { %v763_v58 = vadd.f32 %v293_v55, %v284_v53  ;;  %v765_v59 = vadd.f32 %v293_v55, %v285_v54  ;;  %v298_v60 = vpop.permute.xlu1 %297 }
  0x9a   : > { %v767_v61 = vadd.f32 %v298_v60, %v286_v56  ;;  %v769_v62 = vadd.f32 %v298_v60, %v287_v57 }
  0x9b   : > { %v493_v63 = vmul.f32 -1.442695, %v763_v58  ;;  %v494_v0 = vmul.f32 -1.442695, %v765_v59 }
  0x9c   : > { %v495_v1 = vmul.f32 -1.442695, %v767_v61  ;;  %v496_v2 = vmul.f32 -1.442695, %v769_v62 }
  0x9d   : > { %569 = vpow2.f32 %v493_v63 }
  0x9e   : > { %571 = vpow2.f32 %v494_v0 }
  0x9f   : > { %573 = vpow2.f32 %v495_v1 }
  0xa0   : > { %575 = vpow2.f32 %v496_v2 }
  0xa3   : > { %v570_v3 = vpop.eup %569 }
  0xa4   : > { %v572_v4 = vpop.eup %571  ;;  %v316_v5 = vadd.f32 1.0, %v570_v3 }
  0xa5   : > { %v574_v6 = vpop.eup %573  ;;  %v317_v7 = vadd.f32 1.0, %v572_v4 }
  0xa6   : > { %v576_v8 = vpop.eup %575  ;;  %577 = vrcp.f32 %v316_v5  ;;  %v775_v9 = vadd.f32 1.0, %v574_v6  ;;  %v329_v12 = vand.u32 2147483647, %v316_v5  ;;  %v331_v15 = vand.u32 2147483648, %v316_v5 }
  0xa7   : > { %579 = vrcp.f32 %v317_v7  ;;  %v777_v10 = vadd.f32 1.0, %v576_v8  ;;  %v344_v17 = vand.u32 2147483647, %v317_v7  ;;  %v346_v19 = vand.u32 2147483648, %v317_v7 }
  0xa8   : > { %581 = vrcp.f32 %v775_v9  ;;  %vm325_vm2 = vweird.f32 %v316_v5  ;;  %vm782_vm3 = vcmp.eq.f32.partialorder %v329_v12, 8.507059e+37  ;;  %vm340_vm4 = vweird.f32 %v317_v7 }
  0xa9   : > { %583 = vrcp.f32 %v777_v10  ;;  %v332_v25 = vor.u32 1.1754944e-38, %v331_v15  ;;  %vm789_vm7 = vcmp.eq.f32.partialorder %v344_v17, 8.507059e+37  ;;  %v347_v31 = vor.u32 1.1754944e-38, %v346_v19 }
  0xaa   : > { %v359_v33 = vand.u32 2147483647, %v775_v9  ;;  %v361_v35 = vand.u32 2147483648, %v775_v9  ;;  %v374_v37 = vand.u32 2147483647, %v777_v10  ;;  %v376_v40 = vand.u32 2147483648, %v777_v10 }
  0xab   : > { %vm355_vm12 = vweird.f32 %v775_v9  ;;  %vm370_vm14 = vweird.f32 %v777_v10 }
  0xac   : > { %v578_v11 = vpop.eup %577  ;;  %v362_v48 = vor.u32 1.1754944e-38, %v361_v35  ;;  %vm360_vm15 = vcmp.eq.f32.partialorder %v359_v33, 8.507059e+37  ;;  %v377_v51 = vor.u32 1.1754944e-38, %v376_v40  ;;  %vm375_vm1 = vcmp.eq.f32.partialorder %v374_v37, 8.507059e+37 }
  0xad   : > { %v580_v13 = vpop.eup %579  ;;  %v321_v14 = vmul.f32 %v578_v11, %v316_v5  ;;  %vm326_vm5 = vweird.f32 %v578_v11 }
  0xae   : > { %v336_v16 = vmul.f32 %v580_v13, %v317_v7  ;;  %v582_v20 = vpop.eup %581  ;;  %vm341_vm6 = vweird.f32 %v580_v13  ;;  %vm327_vm8 = vmor %vm325_vm2, %vm326_vm5 }
  0xaf   : > { %v322_v18 = vsub.f32 1.0, %v321_v14  ;;  %v584_v23 = vpop.eup %583  ;;  %v351_v26 = vmul.f32 %v582_v20, %v775_v9  ;;  %vm342_vm9 = vmor %vm340_vm4, %vm341_vm6  ;;  %vm356_vm10 = vweird.f32 %v582_v20 }
  0xb0   : > { %v337_v22 = vsub.f32 1.0, %v336_v16  ;;  %v366_v29 = vmul.f32 %v584_v23, %v777_v10  ;;  %vm371_vm11 = vweird.f32 %v584_v23  ;;  %vm357_vm13 = vmor %vm355_vm12, %vm356_vm10 }
  0xb1   : > { %v323_v24 = vmul.f32 %v578_v11, %v322_v18  ;;  %v352_v32 = vsub.f32 1.0, %v351_v26  ;;  %vm372_vm0 = vmor %vm370_vm14, %vm371_vm11 }
  0xb2   : > { %v338_v27 = vmul.f32 %v580_v13, %v337_v22  ;;  %v367_v36 = vsub.f32 1.0, %v366_v29 }
  0xb3   : > { %v324_v30 = vadd.f32 %v578_v11, %v323_v24  ;;  %v353_v39 = vmul.f32 %v582_v20, %v352_v32 }
  0xb4   : > { %v339_v34 = vadd.f32 %v580_v13, %v338_v27  ;;  %v368_v43 = vmul.f32 %v584_v23, %v367_v36 }
  0xb5   : > { %v328_v38 = vsel %vm327_vm8, %v578_v11, %v324_v30  ;;  %v354_v46 = vadd.f32 %v582_v20, %v353_v39 }
  0xb6   : > { %v333_v41 = vsel %vm782_vm3, %v332_v25, %v328_v38  ;;  %v343_v42 = vsel %vm342_vm9, %v580_v13, %v339_v34  ;;  %v369_v49 = vadd.f32 %v584_v23, %v368_v43 }
  0xb7   : > { %v348_v44 = vsel %vm789_vm7, %v347_v31, %v343_v42  ;;  %v380_v45 = vmul.f32 %v333_v41, %v763_v58  ;;  %v358_v50 = vsel %vm357_vm13, %v582_v20, %v354_v46 }
  0xb8   : > { %v381_v47 = vmul.f32 %v348_v44, %v765_v59  ;;  %v363_v52 = vsel %vm360_vm15, %v362_v48, %v358_v50  ;;  %v373_v53 = vsel %vm372_vm0, %v584_v23, %v369_v49 }
  0xb9   : > { %384 = vst [vmem:[%s188_s27] sm:$0xff] %v380_v45  ;;  %v378_v54 = vsel %vm375_vm1, %v377_v51, %v373_v53  ;;  %v382_v55 = vmul.f32 %v363_v52, %v767_v61 }
  0xba   : > { %385 = vst [vmem:[%s188_s27 + $0x8] sm:$0xff] %v381_v47  ;;  %v383_v56 = vmul.f32 %v378_v54, %v769_v62 }
  0xbb   : > { %386 = vst [vmem:[%s188_s27 + $0x10] sm:$0xff] %v382_v55 }
  0xbc   : > { %387 = vst [vmem:[%s188_s27 + $0x18] sm:$0xff] %v383_v56 }
  0xbd   : > { %612 = shalt.err (!%p609_p5)
}
  0xbe   : > { %s669_s11 = smov 256   ;;  %s670_s18 = smov 16  }
  0xbf   : > { %504 = dma.vmem_to_hbm [thread:$0]  (%p731_p4), %s404_s28, 512, %s406_s29, %s389_s30, %s669_s11, %s669_s11, %s670_s18  }
  0xc0 PF: > { %p510_p6 = scmp.ge.s32.totalorder %s663_s17, 2  ;;  %s420_s19 = sand.u32 1, %s643_s12  }
  0xc1   : > { %s421_s21 = scalar_lea.sflag [#allocation3], %s420_s19 }
  0xc2   : > { %p507_p7 = pnand %p510_p6, %p738_p8 }
  0xc4   : > { %p508_p9 = pneg %p507_p7 }
  0xc6   : > { %638 = dma.done.wait (%p508_p9), %s421_s21, 512  }
  0xc7   : > { %640 = vsyncadd (%p508_p9), %s421_s21, 4294966784  ;;  %s16_s17 = sadd.s32 1, %s663_s17   ;;  %s862_s12 = smov %s647_s13 }
  0xc8   : > { %p13_p10 = scmp.ge.s32.totalorder %s16_s17, 4   ;;  %s863_s13 = smov %s651_s14 }
  0xc9   : > { %s864_s14 = smov %s744_s25  ;;  %s865_s15 = smov %s659_s16 }
  0xca   : > { %s866_s16 = smov %s868_s20  ;;  %15 = sbr.rel (!%p13_p10) target bundleno = 4 (0x4), region = 67 }
  0xcf   :  { %427 = vsyncpa [#allocation3], 1 }
  0xd0   :  { %429 = vsyncpa [#allocation3 + $0x1], 1 }

</bundles_post_ra>
